<compile_context>
chip_gen: v6e
topology: v6e:2x2x1
jax: 0.10.0
libtpu: 0.0.40
codegen_flags: <defaults>
</compile_context>

<pallas_src>
import functools
import math

import jax
import jax.numpy as jnp
import numpy as np
from jax.experimental import pallas as pl
from jax.experimental.pallas import tpu as pltpu


def _round_up(v, m):
    return ((v + m - 1) // m) * m


# ----------------------------- Pallas kernel --------------------------------
def _cnn_classifier_kernel(x_ref,    # (TB, Cin*L)            f32  (cast to bf16 in-kernel)
                           wc_ref,   # (Cin*L, col_pad)       bf16 block-Toeplitz conv weight
                           bc_ref,   # (1, col_pad)           f32  conv bias per (o, l), zero-padded
                           w1_ref,   # (col_pad, hid_pad)     bf16 fc1 weight (transposed, zero-padded)
                           b1_ref,   # (1, hid_pad)           f32
                           w2_ref,   # (hid_pad, nc_pad)      bf16 fc2 weight (transposed, zero-padded)
                           b2_ref,   # (1, nc_pad)            f32
                           out_ref): # (TB, nc_pad)           bf16 lane-dense padded output
    # In-kernel bf16 cast of x (cheap VPU work, hidden under DMA/MXU).
    x = x_ref[...].astype(jnp.bfloat16)

    # conv1d (single block-Toeplitz MXU matmul) + bias + ReLU, f32 accumulation.
    # Zero-padded wc columns / bc lanes give ReLU(0) = 0 in the padded lanes.
    y = jnp.dot(x, wc_ref[...], preferred_element_type=jnp.float32)
    y = jnp.maximum(y + bc_ref[...], 0.0)

    # fc1 + ReLU (output order already matches torch's channel-major flatten).
    h = jnp.dot(y.astype(jnp.bfloat16), w1_ref[...],
                preferred_element_type=jnp.float32)
    h = jnp.maximum(h + b1_ref[...], 0.0)

    # fc2 (zero-padded w2 rows/cols keep padded lanes exactly zero).
    o = jnp.dot(h.astype(jnp.bfloat16), w2_ref[...],
                preferred_element_type=jnp.float32)
    out_ref[...] = (o + b2_ref[...]).astype(out_ref.dtype)


# --------------------------- one-time weight prep ----------------------------
def prepare_params(params, *, in_len, kernel_size):
    """Build kernel-ready weights. Called ONCE (constants w.r.t. the forward pass)."""
    wconv, bconv = params["conv_w"], params["conv_b"]    # (Cout, Cin, K), (Cout,)
    w1, b1 = params["fc1_w"], params["fc1_b"]            # (hidden, Cout*Lout), (hidden,)
    w2, b2 = params["fc2_w"], params["fc2_b"]            # (num_classes, hidden), (num_classes,)

    Cout, Cin, K = wconv.shape
    if K != kernel_size:
        raise ValueError(f"kernel_size mismatch: weight has K={K}, got {kernel_size}")
    L = in_len
    Lout = L - K + 1
    hidden, fc1_in = w1.shape
    if fc1_in != Cout * Lout:
        # The module defines fc1 in-features = out_channels*(out_channels-K+1),
        # which requires the conv input length L to equal out_channels.
        raise ValueError(
            f"fc1 expects {fc1_in} features but conv produces {Cout * Lout}; "
            f"CNNClassifier requires input length L == out_channels.")
    num_classes = w2.shape[0]

    col = Cout * Lout
    col_pad = _round_up(col, 128)          # 240 -> 256: dense vregs / clean MXU tiles
    hid_pad = _round_up(hidden, 128)       # 50  -> 128
    nc_pad = _round_up(num_classes, 128)   # 10  -> 128: lane-dense output width

    # Block-Toeplitz conv matrix:
    #   W[c*L + (l+k), o*Lout + l] = wconv[o, c, k]
    # so that  x.reshape(B, Cin*L) @ W  ==  torch conv1d output flattened
    # channel-major ( .view(B, -1) ), i.e. exactly fc1's expected input order.
    blk = jnp.transpose(wconv, (1, 2, 0))                # (Cin, K, Cout)
    cols = []
    for l in range(Lout):                                # Lout is small & static
        c = jnp.zeros((Cin, L, Cout), wconv.dtype)
        c = jax.lax.dynamic_update_slice(c, blk, (0, l, 0))
        cols.append(c.reshape(Cin * L, Cout))
    wc = jnp.stack(cols, axis=0)                         # (Lout, Cin*L, Cout)
    wc = jnp.transpose(wc, (1, 2, 0)).reshape(Cin * L, col)
    wc = jnp.pad(wc, ((0, 0), (0, col_pad - col)))       # zero-pad columns

    bc = jnp.pad(jnp.repeat(bconv, Lout), (0, col_pad - col)).reshape(1, col_pad)
    w1_p = jnp.pad(jnp.transpose(w1, (1, 0)),            # (col, hidden) -> padded both dims
                   ((0, col_pad - col), (0, hid_pad - hidden)))
    b1_p = jnp.pad(b1, (0, hid_pad - hidden)).reshape(1, hid_pad)
    w2_p = jnp.pad(jnp.transpose(w2, (1, 0)),            # (hidden, nc) -> padded both dims
                   ((0, hid_pad - hidden), (0, nc_pad - num_classes)))
    b2_p = jnp.pad(b2, (0, nc_pad - num_classes)).reshape(1, nc_pad)

    return {
        "wc": wc.astype(jnp.bfloat16),
        "bc": bc.astype(jnp.float32),
        "w1": w1_p.astype(jnp.bfloat16),
        "b1": b1_p.astype(jnp.float32),
        "w2": w2_p.astype(jnp.bfloat16),
        "b2": b2_p.astype(jnp.float32),
    }


# ------------------------------- forward wrapper ------------------------------
@functools.partial(jax.jit, static_argnames=("num_classes",))
def cnn_classifier_forward(x, prepared, *, num_classes):
    """x: (B, C_in, L) float32 (torch NCL). Returns (B, num_classes) float32."""
    B, Cin, L = x.shape
    wc = prepared["wc"]
    cin_l, col_pad = wc.shape
    if cin_l != Cin * L:
        raise ValueError("input (Cin, L) inconsistent with prepared conv weight")
    hid_pad = prepared["w1"].shape[1]
    nc_pad = prepared["w2"].shape[1]

    # Contiguous NCL -> flat reshape (free); x stays f32 — the bf16 cast happens
    # inside the kernel, so there is no extra wrapper-side HBM pass over x.
    x_flat = x.reshape(B, Cin * L)

    # Batch tiling: big tiles (mem/overhead-bound kernel), rounded to 16 rows
    # for bf16 sublane packing. Keep >= 2 even grid steps for large batches so
    # the 'parallel' axis shards across v7x's two TensorCores.
    TB_CAP = 2048
    if B <= 256:
        n_blocks = 1                      # small batch: single step, TB == B, no pad
    elif B <= TB_CAP:
        n_blocks = 2
    else:
        n_blocks = math.ceil(B / TB_CAP)
        if n_blocks % 2:
            n_blocks += 1                 # even step count for v7x TC balance
    TB = math.ceil(B / n_blocks)
    if n_blocks > 1:
        TB = _round_up(TB, 16)
    b_pad = n_blocks * TB
    if b_pad != B:
        # At most ~16*n_blocks zero rows; padded rows compute ReLU(bias)-derived
        # garbage that is sliced off below — never reduce over the padded output.
        x_flat = jnp.pad(x_flat, ((0, b_pad - B), (0, 0)))

    flops = 2 * b_pad * (cin_l * col_pad + col_pad * hid_pad + hid_pad * nc_pad)
    bytes_accessed = (b_pad * cin_l * 4                                  # x read, f32
                      + (wc.size + prepared["w1"].size + prepared["w2"].size) * 2
                      + (col_pad + hid_pad + nc_pad) * 4                 # biases, f32
                      + b_pad * nc_pad * 2)                              # out write, bf16

    out = pl.pallas_call(
        _cnn_classifier_kernel,
        out_shape=jax.ShapeDtypeStruct((b_pad, nc_pad), jnp.bfloat16),
        grid=(n_blocks,),
        in_specs=[
            pl.BlockSpec((TB, cin_l), lambda b: (b, 0)),           # x: batch-tiled, f32
            pl.BlockSpec((cin_l, col_pad), lambda b: (0, 0)),      # weights/biases:
            pl.BlockSpec((1, col_pad), lambda b: (0, 0)),          #   VMEM-resident
            pl.BlockSpec((col_pad, hid_pad), lambda b: (0, 0)),    #   across steps
            pl.BlockSpec((1, hid_pad), lambda b: (0, 0)),
            pl.BlockSpec((hid_pad, nc_pad), lambda b: (0, 0)),
            pl.BlockSpec((1, nc_pad), lambda b: (0, 0)),
        ],
        out_specs=pl.BlockSpec((TB, nc_pad), lambda b: (b, 0)),    # lane-dense bf16 output
        compiler_params=pltpu.CompilerParams(
            dimension_semantics=("parallel",),        # shards batch across v7x's 2 TCs
            vmem_limit_bytes=32 * 1024 * 1024),       # > v5e's 16 MiB scoped default
        cost_estimate=pl.CostEstimate(flops=flops, transcendentals=0,
                                      bytes_accessed=bytes_accessed),
    )(x_flat, prepared["wc"], prepared["bc"], prepared["w1"], prepared["b1"],
      prepared["w2"], prepared["b2"])

    # Slice first (tiny), then cast back to f32 to match the module's output dtype.
    return out[:B, :num_classes].astype(jnp.float32)


# ---------------------------- reference (pure JAX, f32) -----------------------
def reference_forward(x, params, kernel_size):
    """Literal translation of the PyTorch forward (NCL conv, channel-major flatten)."""
    wconv, bconv = params["conv_w"], params["conv_b"]
    B, Cin, L = x.shape
    Cout, _, K = wconv.shape
    Lout = L - K + 1
    y = jnp.zeros((B, Cout, Lout), jnp.float32)
    for k in range(K):
        y = y + jnp.einsum("oc,bcl->bol", wconv[:, :, k], x[:, :, k:k + Lout])
    y = y + bconv[None, :, None]
    y = jnp.maximum(y, 0.0)
    flat = y.reshape(B, Cout * Lout)                     # torch .view(B, -1)
    h = jnp.maximum(flat @ params["fc1_w"].T + params["fc1_b"], 0.0)
    return h @ params["fc2_w"].T + params["fc2_b"]


# --------------------------------- main ---------------------------------------
if __name__ == "__main__":
    # Module config: fc1 in-features = out_channels*(out_channels-K+1) implies
    # the conv input length L must equal out_channels.
    num_classes = 10
    in_channels = 4
    out_channels = 16
    kernel_size = 2
    batch = 2
    L = out_channels
    Lout = L - kernel_size + 1

    key = jax.random.PRNGKey(0)
    k = jax.random.split(key, 8)
    params = {
        "conv_w": jax.random.uniform(k[0], (out_channels, in_channels, kernel_size),
                                     jnp.float32, -0.5, 0.5),
        "conv_b": jax.random.uniform(k[1], (out_channels,), jnp.float32, -0.5, 0.5),
        "fc1_w": jax.random.uniform(k[2], (50, out_channels * Lout),
                                    jnp.float32, -0.1, 0.1),
        "fc1_b": jax.random.uniform(k[3], (50,), jnp.float32, -0.1, 0.1),
        "fc2_w": jax.random.uniform(k[4], (num_classes, 50), jnp.float32, -0.2, 0.2),
        "fc2_b": jax.random.uniform(k[5], (num_classes,), jnp.float32, -0.2, 0.2),
    }
    x = jax.random.normal(k[6], (batch, in_channels, L), jnp.float32)

    prepared = prepare_params(params, in_len=L, kernel_size=kernel_size)
    out = cnn_classifier_forward(x, prepared, num_classes=num_classes)
    out = jax.block_until_ready(out)

    ref = reference_forward(x, params, kernel_size)
    # bf16 MXU operands + bf16 output store, f32 accumulation -> loosened tolerance.
    np.testing.assert_allclose(np.asarray(out), np.asarray(ref), rtol=3e-2, atol=3e-2)

    assert out.shape == (batch, num_classes)
    print("KERNEL_OK")
</pallas_src>

<mosaic_0001>
module attributes {stable_mosaic.version = 11 : i64} {
  func.func @_cnn_classifier_kernel(%arg0: i32, %arg1: memref<2x64xf32, #tpu.memory_space<vmem>>, %arg2: memref<64x256xbf16, #tpu.memory_space<vmem>>, %arg3: memref<1x256xf32, #tpu.memory_space<vmem>>, %arg4: memref<256x128xbf16, #tpu.memory_space<vmem>>, %arg5: memref<1x128xf32, #tpu.memory_space<vmem>>, %arg6: memref<128x128xbf16, #tpu.memory_space<vmem>>, %arg7: memref<1x128xf32, #tpu.memory_space<vmem>>, %arg8: memref<2x128xbf16, #tpu.memory_space<vmem>>) attributes {dimension_semantics = [#tpu.dimension_semantics<parallel>], iteration_bounds = array<i64: 1>, scalar_prefetch = 0 : i64, scratch_operands = 0 : i64, tpu.core_type = #tpu.core_type<tc>, window_params = [{transform_indices = @transform_0, window_bounds = array<i64: 2, 64>}, {pipeline_mode = #tpu.pipeline_mode<synchronous>, transform_indices = @transform_1, window_bounds = array<i64: 64, 256>}, {pipeline_mode = #tpu.pipeline_mode<synchronous>, transform_indices = @transform_2, window_bounds = array<i64: 1, 256>}, {pipeline_mode = #tpu.pipeline_mode<synchronous>, transform_indices = @transform_3, window_bounds = array<i64: 256, 128>}, {pipeline_mode = #tpu.pipeline_mode<synchronous>, transform_indices = @transform_4, window_bounds = array<i64: 1, 128>}, {pipeline_mode = #tpu.pipeline_mode<synchronous>, transform_indices = @transform_5, window_bounds = array<i64: 128, 128>}, {pipeline_mode = #tpu.pipeline_mode<synchronous>, transform_indices = @transform_6, window_bounds = array<i64: 1, 128>}, {transform_indices = @transform_7, window_bounds = array<i64: 2, 128>}]} {
    %c0 = arith.constant 0 : index
    %c0_0 = arith.constant 0 : index
    %0 = vector.load %arg1[%c0, %c0_0] : memref<2x64xf32, #tpu.memory_space<vmem>>, vector<2x64xf32>
    %1 = arith.truncf %0 : vector<2x64xf32> to vector<2x64xbf16>
    %c0_1 = arith.constant 0 : index
    %c0_2 = arith.constant 0 : index
    %2 = vector.load %arg2[%c0_1, %c0_2] : memref<64x256xbf16, #tpu.memory_space<vmem>>, vector<64x256xbf16>
    %cst = arith.constant dense<0.000000e+00> : vector<2x256xf32>
    %3 = tpu.matmul %1, %2, %cst {dimension_numbers = #tpu.dot_dimension_numbers<[1], [0], [0], [1], [0, 0, 1, 1], [], []>} : vector<2x64xbf16>, vector<64x256xbf16>, vector<2x256xf32> -> vector<2x256xf32>
    %c0_3 = arith.constant 0 : index
    %c0_4 = arith.constant 0 : index
    %4 = vector.load %arg3[%c0_3, %c0_4] : memref<1x256xf32, #tpu.memory_space<vmem>>, vector<1x256xf32>
    %5 = vector.broadcast %4 : vector<1x256xf32> to vector<2x256xf32>
    %6 = arith.addf %3, %5 : vector<2x256xf32>
    %cst_5 = arith.constant 0.000000e+00 : f32
    %7 = vector.broadcast %cst_5 : f32 to vector<2x256xf32>
    %8 = arith.maximumf %6, %7 : vector<2x256xf32>
    %9 = arith.truncf %8 : vector<2x256xf32> to vector<2x256xbf16>
    %c0_6 = arith.constant 0 : index
    %c0_7 = arith.constant 0 : index
    %10 = vector.load %arg4[%c0_6, %c0_7] : memref<256x128xbf16, #tpu.memory_space<vmem>>, vector<256x128xbf16>
    %cst_8 = arith.constant dense<0.000000e+00> : vector<2x128xf32>
    %11 = tpu.matmul %9, %10, %cst_8 {dimension_numbers = #tpu.dot_dimension_numbers<[1], [0], [0], [1], [0, 0, 1, 1], [], []>} : vector<2x256xbf16>, vector<256x128xbf16>, vector<2x128xf32> -> vector<2x128xf32>
    %c0_9 = arith.constant 0 : index
    %c0_10 = arith.constant 0 : index
    %12 = vector.load %arg5[%c0_9, %c0_10] : memref<1x128xf32, #tpu.memory_space<vmem>>, vector<1x128xf32>
    %13 = vector.broadcast %12 : vector<1x128xf32> to vector<2x128xf32>
    %14 = arith.addf %11, %13 : vector<2x128xf32>
    %cst_11 = arith.constant 0.000000e+00 : f32
    %15 = vector.broadcast %cst_11 : f32 to vector<2x128xf32>
    %16 = arith.maximumf %14, %15 : vector<2x128xf32>
    %17 = arith.truncf %16 : vector<2x128xf32> to vector<2x128xbf16>
    %c0_12 = arith.constant 0 : index
    %c0_13 = arith.constant 0 : index
    %18 = vector.load %arg6[%c0_12, %c0_13] : memref<128x128xbf16, #tpu.memory_space<vmem>>, vector<128x128xbf16>
    %cst_14 = arith.constant dense<0.000000e+00> : vector<2x128xf32>
    %19 = tpu.matmul %17, %18, %cst_14 {dimension_numbers = #tpu.dot_dimension_numbers<[1], [0], [0], [1], [0, 0, 1, 1], [], []>} : vector<2x128xbf16>, vector<128x128xbf16>, vector<2x128xf32> -> vector<2x128xf32>
    %c0_15 = arith.constant 0 : index
    %c0_16 = arith.constant 0 : index
    %20 = vector.load %arg7[%c0_15, %c0_16] : memref<1x128xf32, #tpu.memory_space<vmem>>, vector<1x128xf32>
    %21 = vector.broadcast %20 : vector<1x128xf32> to vector<2x128xf32>
    %22 = arith.addf %19, %21 : vector<2x128xf32>
    %23 = arith.truncf %22 : vector<2x128xf32> to vector<2x128xbf16>
    %c0_17 = arith.constant 0 : index
    %c0_18 = arith.constant 0 : index
    %24 = vector.load %arg8[%c0_17, %c0_18] : memref<2x128xbf16, #tpu.memory_space<vmem>>, vector<2x128xbf16>
    tpu.vector_store %arg8[%c0_17, %c0_18], %23 {strides = array<i32>} : memref<2x128xbf16, #tpu.memory_space<vmem>>, vector<2x128xbf16>,
    return
  }
  func.func @transform_0(%arg0: i32) -> (i32, i32) {
    %c0_i32 = arith.constant 0 : i32
    %c0_i32_0 = arith.constant 0 : i32
    return %arg0, %c0_i32 : i32, i32
  }
  func.func @transform_1(%arg0: i32) -> (i32, i32) {
    %c0_i32 = arith.constant 0 : i32
    %c0_i32_0 = arith.constant 0 : i32
    %c0_i32_1 = arith.constant 0 : i32
    return %c0_i32, %c0_i32_0 : i32, i32
  }
  func.func @transform_2(%arg0: i32) -> (i32, i32) {
    %c0_i32 = arith.constant 0 : i32
    %c0_i32_0 = arith.constant 0 : i32
    %c0_i32_1 = arith.constant 0 : i32
    return %c0_i32, %c0_i32_0 : i32, i32
  }
  func.func @transform_3(%arg0: i32) -> (i32, i32) {
    %c0_i32 = arith.constant 0 : i32
    %c0_i32_0 = arith.constant 0 : i32
    %c0_i32_1 = arith.constant 0 : i32
    return %c0_i32, %c0_i32_0 : i32, i32
  }
  func.func @transform_4(%arg0: i32) -> (i32, i32) {
    %c0_i32 = arith.constant 0 : i32
    %c0_i32_0 = arith.constant 0 : i32
    %c0_i32_1 = arith.constant 0 : i32
    return %c0_i32, %c0_i32_0 : i32, i32
  }
  func.func @transform_5(%arg0: i32) -> (i32, i32) {
    %c0_i32 = arith.constant 0 : i32
    %c0_i32_0 = arith.constant 0 : i32
    %c0_i32_1 = arith.constant 0 : i32
    return %c0_i32, %c0_i32_0 : i32, i32
  }
  func.func @transform_6(%arg0: i32) -> (i32, i32) {
    %c0_i32 = arith.constant 0 : i32
    %c0_i32_0 = arith.constant 0 : i32
    %c0_i32_1 = arith.constant 0 : i32
    return %c0_i32, %c0_i32_0 : i32, i32
  }
  func.func @transform_7(%arg0: i32) -> (i32, i32) {
    %c0_i32 = arith.constant 0 : i32
    %c0_i32_0 = arith.constant 0 : i32
    return %arg0, %c0_i32 : i32, i32
  }
}

</mosaic_0001>

<bundles_post_ra>
// kernel: cnn_classifier_forward.1
= control target key start
LH: loop header
LB: loop body
LE: loop exit
PB: predicated region body
PF: predicated region fallthrough
CT: control target
= control target key end

     0   :  { %12 = vsyncpa [#allocation3], 0  ;;  %s745_s0 = inlined_call_operand.vmem [shape: f32[2,64], index: 0, kind: input, shape index: {}]   ;;  %s746_s1 = inlined_call_operand.hbm [shape: bf16[64,256], index: 1, kind: input, shape index: {}]   ;;  %s747_s2 = inlined_call_operand.vmem [shape: f32[1,256], index: 2, kind: input, shape index: {}]   ;;  %s748_s3 = inlined_call_operand.hbm [shape: bf16[256,128], index: 3, kind: input, shape index: {}]   ;;  %s749_s4 = inlined_call_operand.vmem [shape: f32[1,128], index: 4, kind: input, shape index: {}]   ;;  %s750_s5 = inlined_call_operand.hbm [shape: bf16[128,128], index: 5, kind: input, shape index: {}]   ;;  %s751_s6 = inlined_call_operand.vmem [shape: f32[1,128], index: 6, kind: input, shape index: {}]   ;;  %s752_s7 = inlined_call_operand.vmem [shape: bf16[2,128], index: 7, kind: output, shape index: {}]  }
   0x1   :  { %13 = vsyncpa [#allocation5], 0  ;;  %s671_s24 = smov [#allocation4]  }
   0x2   :  { %s35_s25 = sshll.u32 %s671_s24, 4  ;;  %s36_s25 = int_to_ptr.vmem [resolvable:$true] %s35_s25 }
   0x3   :  { %s615_s26 = scalar_lea.vmem %s36_s25, 2048  ;;  %p620_p1 = scmp.lt.s32.totalorder %s36_s25, %s36_s25 }
   0x4   :  { %p616_p0 = scmp.ne.s32.totalorder %s36_s25, %s615_s26  ;;  %p621_p2 = scmp.lt.s32.totalorder %s615_s26, %s615_s26 }
   0x6   :  { %p622_p3 = por %p621_p2, %p620_p1 }
   0x8   :  { %p623_p4 = pnand %p622_p3, %p616_p0 }
   0xa   :  { %626 = shalt.err (!%p623_p4)
}
   0xb   :  { %s672_s27 = smov 64   ;;  %s673_s28 = smov 4  }
   0xc   :  { %41 = dma.hbm_to_vmem [thread:$0]  %s748_s3, 2048, %s36_s25, [#allocation5], %s672_s27, %s672_s27, %s673_s28  }
   0xd   :  { %s674_s8 = smov [#allocation2]  }
   0xe   :  { %s21_s9 = sshll.u32 %s674_s8, 4  ;;  %s22_s9 = int_to_ptr.vmem [resolvable:$true] %s21_s9 }
   0xf   :  { %s635_s10 = scalar_lea.vmem %s22_s9, 1024  ;;  %p640_p6 = scmp.lt.s32.totalorder %s22_s9, %s22_s9 }
  0x10   :  { %p636_p5 = scmp.ne.s32.totalorder %s22_s9, %s635_s10  ;;  %p641_p7 = scmp.lt.s32.totalorder %s635_s10, %s635_s10 }
  0x12   :  { %p642_p8 = por %p641_p7, %p640_p6 }
  0x14   :  { %p643_p9 = pnand %p642_p8, %p636_p5 }
  0x16   :  { %646 = shalt.err (!%p643_p9)
}
  0x17   :  { %s675_s11 = smov 128   ;;  %s676_s12 = smov 8  }
  0x18   :  { %27 = dma.hbm_to_vmem [thread:$0]  %s746_s1, 1024, %s22_s9, [#allocation3], %s675_s11, %s675_s11, %s676_s12  }
  0x19   :  { %s677_s15 = smov [#allocation6]  }
  0x1a   :  { %s49_s16 = sshll.u32 %s677_s15, 4  ;;  %s50_s16 = int_to_ptr.vmem [resolvable:$true] %s49_s16 }
  0x1b   :  { %s655_s3 = scalar_lea.vmem %s50_s16, 1024  ;;  %p660_p11 = scmp.lt.s32.totalorder %s50_s16, %s50_s16 }
  0x1c   :  { %p656_p10 = scmp.ne.s32.totalorder %s50_s16, %s655_s3  ;;  %p661_p12 = scmp.lt.s32.totalorder %s655_s3, %s655_s3 }
  0x1e   :  { %p662_p13 = por %p661_p12, %p660_p11 }
  0x20   :  { %p663_p0 = pnand %p662_p13, %p656_p10 }
  0x22   :  { %666 = shalt.err (!%p663_p0)
}
  0x23   :  { %55 = dma.hbm_to_vmem [thread:$0]  %s750_s5, 1024, %s50_s16, [#allocation5], %s672_s27, %s672_s27, %s673_s28  }
  0x24   :  { %667 = dma.done.wait [#allocation3], 1024  }
  0x25   :  { %668 = vsyncadd [#allocation3], 4294966272 }
  0x26   :  { %669 = dma.done.wait [#allocation5], 3072  }
  0x27   :  { %670 = vsyncadd [#allocation5], 4294964224  ;;  %v678_v0 = vmov 0   ;;  %v571_v1 = vld [vmem:[#allocation2 + $0x34] ss:$8 sps:$4 sm:$0xff]   ;;  %v587_v13 = vld [vmem:[#allocation4 + $0x68] sm:$0xff]   ;;  %v80_v33 = vlaneseq }
  0x28   :  { %166 = vmatprep.mubr.bf16.mxu0 %v678_v0  ;;  %v573_v2 = vld [vmem:[#allocation2 + $0x30] ss:$8 sps:$4 sm:$0xff]   ;;  %142 = vmatprep.subr.bf16.mxu0 %v571_v1  ;;  %v574_v3 = vld [vmem:[#allocation2 + $0x24] ss:$8 sps:$4 sm:$0xff]   ;;  %v576_v4 = vld [vmem:[#allocation2 + $0x20] ss:$8 sps:$4 sm:$0xff]  }
  0x29   :  { %143 = vmatpush1.bf16.msra.mxu0 %v573_v2  ;;  %v577_v5 = vld [vmem:[#allocation2 + $0x14] ss:$8 sps:$4 sm:$0xff]   ;;  %v579_v6 = vld [vmem:[#allocation2 + $0x10] ss:$8 sps:$4 sm:$0xff]   ;;  %v580_v7 = vld [vmem:[#allocation2 + $0x4] ss:$8 sps:$4 sm:$0xff]  }
  0x2a   :  { %144 = vmatprep.subr.bf16.mxu0 %v574_v3  ;;  %v583_v8 = vld [vmem:[#allocation4 + $0x78] sm:$0xff]   ;;  %v585_v10 = vld [vmem:[#allocation4 + $0x70] sm:$0xff]   ;;  %v582_v11 = vld [vmem:[#allocation2] ss:$8 sps:$4 sm:$0xff]   ;;  %vm130_vm0 = vcmask 523264   ;;  %v679_v28 = vmov 0.0  }
  0x2b   :  { %v584_v9 = vld [vmem:[#allocation4 + $0x38] sm:$0xff]   ;;  %510 = vmatprep.subr.bf16.mxu1 %v583_v8  ;;  %v586_v12 = vld [vmem:[#allocation4 + $0x30] sm:$0xff]   ;;  %v68_v14 = vld [vmem:[%s745_s0] sm:$0x3]  ;;  %v81_v34 = vshrl.u32 %v80_v33, 7  ;;  %vm680_vm1 = vmmov 0  }
  0x2c   :  { %511 = vmatpush3.bf16.msra.mxu1 %v584_v9  ;;  %v588_v15 = vld [vmem:[#allocation4 + $0x28] sm:$0xff]   ;;  %v69_v16 = vpack.c.bf16 %v68_v14, %v68_v14  ;;  %v589_v17 = vld [vmem:[#allocation4 + $0x60] sm:$0xff]   ;;  %v591_v19 = vld [vmem:[#allocation4 + $0x58] sm:$0xff]  }
  0x2d   :  { %145 = vmatpush1.bf16.msra.mxu0 %v576_v4  ;;  %512 = vmatprep.subr.bf16.mxu1 %v585_v10  ;;  %v590_v18 = vld [vmem:[#allocation4 + $0x20] sm:$0xff]   ;;  %v592_v20 = vld [vmem:[#allocation4 + $0x18] sm:$0xff]   ;;  %v593_v21 = vld [vmem:[#allocation4 + $0x50] sm:$0xff]   ;;  %v82_v35 = vsub.s32 0, %v81_v34  ;;  %v86_v37 = vsub.s32 1, %v81_v34 }
  0x2e   :  { %146 = vmatprep.subr.bf16.mxu0 %v577_v5  ;;  %v594_v22 = vld [vmem:[#allocation4 + $0x10] sm:$0xff]   ;;  %v595_v23 = vld [vmem:[#allocation4 + $0x48] sm:$0xff]   ;;  %v597_v25 = vld [vmem:[#allocation4 + $0x40] sm:$0xff]  }
  0x2f   :  { %v596_v24 = vld [vmem:[#allocation4 + $0x8] sm:$0xff]   ;;  %v598_v26 = vld [vmem:[#allocation4] sm:$0xff]   ;;  %v599_v27 = vld [vmem:[#allocation6 + $0x38] sm:$0xff]  }
  0x30   :  { %513 = vmatpush3.bf16.msra.mxu1 %v586_v12  ;;  %v600_v29 = vld [vmem:[#allocation6 + $0x30] sm:$0xff]   ;;  %v601_v30 = vld [vmem:[#allocation6 + $0x28] sm:$0xff]   ;;  %v602_v31 = vld [vmem:[#allocation6 + $0x20] sm:$0xff]  }
  0x31   :  { %147 = vmatpush1.bf16.msra.mxu0 %v579_v6  ;;  %514 = vmatprep.subr.bf16.mxu1 %v587_v13  ;;  %v603_v32 = vld [vmem:[#allocation6 + $0x18] sm:$0xff]   ;;  %v78_v36 = vld [vmem:[%s747_s2] sm:$0x3]  ;;  %v604_v50 = vld [vmem:[#allocation6 + $0x10] sm:$0xff]  }
  0x32   :  { %148 = vmatprep.subr.bf16.mxu0 %v580_v7  ;;  %v83_v38 = vrot.slane %v78_v36, %v82_v35  ;;  %v87_v39 = vrot.slane %v78_v36, %v86_v37  ;;  %v605_v51 = vld [vmem:[#allocation6 + $0x8] sm:$0xff]   ;;  %v606_v52 = vld [vmem:[#allocation6] sm:$0xff]  }
  0x33   :  { %v484_v54 = vld [vmem:[%s749_s4] ss:$0 sm:$0xff] }
  0x34   :  { %515 = vmatpush3.bf16.msra.mxu1 %v588_v15  ;;  %v501_v62 = vld [vmem:[%s751_s6] ss:$0 sm:$0xff] }
  0x35   :  { %149 = vmatpush1.bf16.msra.mxu0 %v582_v11  ;;  %516 = vmatprep.subr.bf16.mxu1 %v589_v17 }
  0x36   :  { %541 = vmatprep.subr.bf16.mxu0 %v679_v28 }
  0x38   :  { %483 = vmatmul.mubr.msk.bf16.vlgmr.msra.gmra.mxu0 %vm130_vm0, %v69_v16  ;;  %517 = vmatpush3.bf16.msra.mxu1 %v590_v18 }
  0x39   :  { %518 = vmatprep.subr.bf16.mxu1 %v591_v19  ;;  %542 = vmatpush3.bf16.msra.mxu0 %v599_v27 }
  0x3a   :  { %543 = vmatprep.subr.bf16.mxu0 %v679_v28  ;;  %557 = vmatprep.mubr.msk.bf16.mxu0 %vm680_vm1, %v679_v28 }
  0x3c   :  { %519 = vmatpush3.bf16.msra.mxu1 %v592_v20 }
  0x3d   :  { %520 = vmatprep.subr.bf16.mxu1 %v593_v21  ;;  %544 = vmatpush3.bf16.msra.mxu0 %v600_v29 }
  0x3e   :  { %545 = vmatprep.subr.bf16.mxu0 %v679_v28 }
  0x40   :  { %521 = vmatpush3.bf16.msra.mxu1 %v594_v22 }
  0x41   :  { %522 = vmatprep.subr.bf16.mxu1 %v595_v23  ;;  %546 = vmatpush3.bf16.msra.mxu0 %v601_v30 }
  0x42   :  { %547 = vmatprep.subr.bf16.mxu0 %v679_v28 }
  0x44   :  { %523 = vmatpush3.bf16.msra.mxu1 %v596_v24 }
  0x45   :  { %524 = vmatprep.subr.bf16.mxu1 %v597_v25  ;;  %548 = vmatpush3.bf16.msra.mxu0 %v602_v31 }
  0x46   :  { %549 = vmatprep.subr.bf16.mxu0 %v679_v28 }
  0x48   :  { %525 = vmatpush3.bf16.msra.mxu1 %v598_v26 }
  0x49   :  { %550 = vmatpush3.bf16.msra.mxu0 %v603_v32 }
  0x4a   :  { %551 = vmatprep.subr.bf16.mxu0 %v679_v28 }
  0x4d   :  { %552 = vmatpush3.bf16.msra.mxu0 %v604_v50 }
  0x4e   :  { %553 = vmatprep.subr.bf16.mxu0 %v679_v28 }
  0x51   :  { %554 = vmatpush3.bf16.msra.mxu0 %v605_v51 }
  0x52   :  { %555 = vmatprep.subr.bf16.mxu0 %v679_v28 }
  0x55   :  { %556 = vmatpush3.bf16.msra.mxu0 %v606_v52 }
  0xf8   :  { %v168_v40 = vpop.f32.mrf.mxu0 }
  0xf9   :  { %v169_v41 = vadd.f32 %v168_v40, %v83_v38 }
  0xfa   :  { %v170_v42 = vpop.f32.mrf.mxu0 }
  0xfb   :  { %v171_v43 = vadd.f32 %v170_v42, %v87_v39  ;;  %v175_v44 = vmax.f32 %v169_v41, 0.0 }
  0xfc   :  { %v172_v45 = vpop.f32.mrf.mxu0 }
  0xfd   :  { %v176_v46 = vmax.f32 %v171_v43, 0.0  ;;  %v177_v49 = vpack.c.bf16 %v175_v44, %v175_v44 }
  0xfe   :  { %v173_v47 = vpop.f32.mrf.mxu0 }
  0xff   :  { %v178_v48 = vpack.c.bf16 %v176_v46, %v176_v46 }
 0x101   :  { %346 = vmatprep.mubr.bf16.mxu1 %v178_v48 }
 0x102   :  { %347 = vmatmul.mubr.bf16.vlgmr.msra.gmra.mxu1 %v177_v49 }
 0x1c2   :  { %v526_v53 = vpop.f32.mrf.mxu1 }
 0x1c4   :  { %v527_v55 = vpop.f32.mrf.mxu1 }
 0x1c5   :  { %v528_v56 = vadd.f32 %v527_v55, %v526_v53 }
 0x1c6   :  { %v529_v57 = vpop.f32.mrf.mxu1 }
 0x1c7   :  { %v349_v58 = vadd.f32 %v528_v56, %v484_v54 }
 0x1c8   :  { %v530_v59 = vpop.f32.mrf.mxu1 }
 0x1c9   :  { %v354_v60 = vmax.f32 %v349_v58, 0.0 }
 0x1cb   :  { %v355_v61 = vpack.c.bf16 %v354_v60, %v354_v60 }
 0x1cd   :  { %558 = vmatmul.mubr.bf16.vlgmr.msra.gmra.mxu0 %v355_v61 }
 0x28d   :  { %v461_v63 = vpop.f32.mrf.mxu0 }
 0x28e   :  { %v462_v0 = vadd.f32 %v501_v62, %v461_v63 }
 0x28f   :  { %v559_v1 = vpop.f32.mrf.mxu0 }
 0x290   :  { %v467_v2 = vpack.c.bf16 %v462_v0, %v462_v0 }
 0x291   :  { %v464_v3 = vpop.f32.mrf.mxu0 }
 0x292   :  { %468 = vst [vmem:[%s752_s7] sm:$0x1] %v467_v2 }
 0x293   :  { %v560_v4 = vpop.f32.mrf.mxu0 }
 0x294   :  { %473 = vsyncpa [#allocation3], 1 }
 0x295   :  { %474 = vsyncpa [#allocation5], 1 }

</bundles_post_ra>
